<compile_context>
chip_gen: v6e
topology: v6e:2x2x1
jax: 0.10.0
libtpu: 0.0.40
codegen_flags: <defaults>
</compile_context>

<pallas_src>
import jax
import jax.numpy as jnp
from jax.experimental import pallas as pl
from jax.experimental.pallas import tpu as pltpu

_IN, _HID, _OUT = 6, 16, 32
_NEG_SLOPE = 0.2


def _mlp_kernel(x_ref, w1_ref, b1_ref, w2_ref, b2_ref, o_ref):
    # One batch tile per grid step; both matmuls + LeakyReLUs on this tile.
    x = x_ref[...].astype(jnp.float32)                                  # (TB, 6)
    h = jnp.dot(x, w1_ref[...], preferred_element_type=jnp.float32)     # (TB, 16)
    h = h + b1_ref[...]
    h = jnp.where(h > 0, h, _NEG_SLOPE * h)                             # LeakyReLU(0.2)
    z = jnp.dot(h, w2_ref[...], preferred_element_type=jnp.float32)     # (TB, 32)
    z = z + b2_ref[...]
    z = jnp.where(z > 0, z, _NEG_SLOPE * z)                             # LeakyReLU(0.2)
    o_ref[...] = z.astype(o_ref.dtype)


def discriminator_client_1_forward(img, w1, b1, w2, b2, *,
                                   block_rows=8192, out_dtype=jnp.float32):
    """img: (B, ...) flattened to (B, 6) -> latent (B, 32)."""
    B = img.shape[0]
    x = img.reshape(B, -1)                       # metadata-only reshape
    assert x.shape[1] == _IN, f"expected {_IN} flattened features, got {x.shape[1]}"

    w1f = w1.astype(jnp.float32)
    w2f = w2.astype(jnp.float32)
    b1_2d = b1.reshape(1, _HID).astype(jnp.float32)
    b2_2d = b2.reshape(1, _OUT).astype(jnp.float32)

    # Batch tile: big enough to amortize per-step overhead, capped for small B,
    # always a multiple of 8 (sublane constraint on the second-to-last dim).
    tb = max(8, min(int(block_rows), B))
    tb = ((tb + 7) // 8) * 8
    grid = (pl.cdiv(B, tb),)

    out_itemsize = jnp.dtype(out_dtype).itemsize
    cost = pl.CostEstimate(
        flops=2 * B * (_IN * _HID + _HID * _OUT),
        transcendentals=0,
        bytes_accessed=B * (_IN * x.dtype.itemsize + _OUT * out_itemsize)
        + 4 * (w1f.size + w2f.size + b1_2d.size + b2_2d.size),
    )

    out = pl.pallas_call(
        _mlp_kernel,
        out_shape=jax.ShapeDtypeStruct((B, _OUT), out_dtype),
        grid=grid,
        in_specs=[
            pl.BlockSpec((tb, _IN), lambda i: (i, 0)),       # x tile, pipelined
            pl.BlockSpec((_IN, _HID), lambda i: (0, 0)),     # w1 (VMEM-resident)
            pl.BlockSpec((1, _HID), lambda i: (0, 0)),       # b1 (VMEM-resident)
            pl.BlockSpec((_HID, _OUT), lambda i: (0, 0)),    # w2 (VMEM-resident)
            pl.BlockSpec((1, _OUT), lambda i: (0, 0)),       # b2 (VMEM-resident)
        ],
        out_specs=pl.BlockSpec((tb, _OUT), lambda i: (i, 0)),
        compiler_params=pltpu.CompilerParams(
            dimension_semantics=("parallel",),               # megacore on v7x
        ),
        cost_estimate=cost,
    )(x, w1f, b1_2d, w2f, b2_2d)
    return out


def init_params(key):
    """Deterministic init mirroring nn.Linear's U(-1/sqrt(fan_in), 1/sqrt(fan_in))."""
    k1, k2, k3, k4 = jax.random.split(key, 4)
    lim1 = 1.0 / jnp.sqrt(6.0)
    lim2 = 1.0 / jnp.sqrt(16.0)
    w1 = jax.random.uniform(k1, (_IN, _HID), jnp.float32, -lim1, lim1)
    b1 = jax.random.uniform(k2, (_HID,), jnp.float32, -lim1, lim1)
    w2 = jax.random.uniform(k3, (_HID, _OUT), jnp.float32, -lim2, lim2)
    b2 = jax.random.uniform(k4, (_OUT,), jnp.float32, -lim2, lim2)
    return w1, b1, w2, b2


def _reference(img, w1, b1, w2, b2):
    x = img.reshape(img.shape[0], -1).astype(jnp.float32)
    h = x @ w1 + b1
    h = jnp.where(h > 0, h, _NEG_SLOPE * h)
    z = h @ w2 + b2
    return jnp.where(z > 0, z, _NEG_SLOPE * z)


if __name__ == "__main__":
    key = jax.random.PRNGKey(0)
    k_img, k_img2, k_par = jax.random.split(key, 3)
    w1, b1, w2, b2 = init_params(k_par)

    # 1) Tiny batch (single grid step, padded tile).
    img = jax.random.normal(k_img, (4, 6), jnp.float32)
    latent = jax.block_until_ready(discriminator_client_1_forward(img, w1, b1, w2, b2))
    ref = _reference(img, w1, b1, w2, b2)
    assert latent.shape == (4, _OUT)
    assert jnp.allclose(latent, ref, atol=1e-5, rtol=1e-5)

    # 2) Multi-tile grid with a ragged tail (exercises pipelining + block padding).
    img2 = jax.random.normal(k_img2, (300, 2, 3), jnp.float32)   # flattens to 6 features
    latent2 = jax.block_until_ready(
        discriminator_client_1_forward(img2, w1, b1, w2, b2, block_rows=128))
    ref2 = _reference(img2, w1, b1, w2, b2)
    assert latent2.shape == (300, _OUT)
    assert jnp.allclose(latent2, ref2, atol=1e-5, rtol=1e-5)

    print("KERNEL_OK")
</pallas_src>

<mosaic_0001>
module attributes {stable_mosaic.version = 11 : i64} {
  func.func @_mlp_kernel(%arg0: i32, %arg1: memref<8x6xf32, #tpu.memory_space<vmem>>, %arg2: memref<6x16xf32, #tpu.memory_space<vmem>>, %arg3: memref<1x16xf32, #tpu.memory_space<vmem>>, %arg4: memref<16x32xf32, #tpu.memory_space<vmem>>, %arg5: memref<1x32xf32, #tpu.memory_space<vmem>>, %arg6: memref<8x32xf32, #tpu.memory_space<vmem>>) attributes {dimension_semantics = [#tpu.dimension_semantics<parallel>], iteration_bounds = array<i64: 1>, scalar_prefetch = 0 : i64, scratch_operands = 0 : i64, tpu.core_type = #tpu.core_type<tc>, window_params = [{transform_indices = @transform_0, window_bounds = array<i64: 8, 6>}, {pipeline_mode = #tpu.pipeline_mode<synchronous>, transform_indices = @transform_1, window_bounds = array<i64: 6, 16>}, {pipeline_mode = #tpu.pipeline_mode<synchronous>, transform_indices = @transform_2, window_bounds = array<i64: 1, 16>}, {pipeline_mode = #tpu.pipeline_mode<synchronous>, transform_indices = @transform_3, window_bounds = array<i64: 16, 32>}, {pipeline_mode = #tpu.pipeline_mode<synchronous>, transform_indices = @transform_4, window_bounds = array<i64: 1, 32>}, {transform_indices = @transform_5, window_bounds = array<i64: 8, 32>}]} {
    %c0 = arith.constant 0 : index
    %c0_0 = arith.constant 0 : index
    %0 = vector.load %arg1[%c0, %c0_0] : memref<8x6xf32, #tpu.memory_space<vmem>>, vector<8x6xf32>
    %c0_1 = arith.constant 0 : index
    %c0_2 = arith.constant 0 : index
    %1 = vector.load %arg2[%c0_1, %c0_2] : memref<6x16xf32, #tpu.memory_space<vmem>>, vector<6x16xf32>
    %cst = arith.constant dense<0.000000e+00> : vector<8x16xf32>
    %2 = tpu.matmul %0, %1, %cst {dimension_numbers = #tpu.dot_dimension_numbers<[1], [0], [0], [1], [0, 0, 1, 1], [], []>} : vector<8x6xf32>, vector<6x16xf32>, vector<8x16xf32> -> vector<8x16xf32>
    %c0_3 = arith.constant 0 : index
    %c0_4 = arith.constant 0 : index
    %3 = vector.load %arg3[%c0_3, %c0_4] : memref<1x16xf32, #tpu.memory_space<vmem>>, vector<1x16xf32>
    %4 = vector.broadcast %3 : vector<1x16xf32> to vector<8x16xf32>
    %5 = arith.addf %2, %4 : vector<8x16xf32>
    %cst_5 = arith.constant 0.000000e+00 : f32
    %6 = vector.broadcast %cst_5 : f32 to vector<8x16xf32>
    %7 = arith.cmpf ogt, %5, %6 : vector<8x16xf32>
    %cst_6 = arith.constant 2.000000e-01 : f32
    %8 = vector.broadcast %cst_6 : f32 to vector<8x16xf32>
    %9 = arith.mulf %8, %5 : vector<8x16xf32>
    %10 = arith.select %7, %5, %9 : vector<8x16xi1>, vector<8x16xf32>
    %c0_7 = arith.constant 0 : index
    %c0_8 = arith.constant 0 : index
    %11 = vector.load %arg4[%c0_7, %c0_8] : memref<16x32xf32, #tpu.memory_space<vmem>>, vector<16x32xf32>
    %cst_9 = arith.constant dense<0.000000e+00> : vector<8x32xf32>
    %12 = tpu.matmul %10, %11, %cst_9 {dimension_numbers = #tpu.dot_dimension_numbers<[1], [0], [0], [1], [0, 0, 1, 1], [], []>} : vector<8x16xf32>, vector<16x32xf32>, vector<8x32xf32> -> vector<8x32xf32>
    %c0_10 = arith.constant 0 : index
    %c0_11 = arith.constant 0 : index
    %13 = vector.load %arg5[%c0_10, %c0_11] : memref<1x32xf32, #tpu.memory_space<vmem>>, vector<1x32xf32>
    %14 = vector.broadcast %13 : vector<1x32xf32> to vector<8x32xf32>
    %15 = arith.addf %12, %14 : vector<8x32xf32>
    %cst_12 = arith.constant 0.000000e+00 : f32
    %16 = vector.broadcast %cst_12 : f32 to vector<8x32xf32>
    %17 = arith.cmpf ogt, %15, %16 : vector<8x32xf32>
    %cst_13 = arith.constant 2.000000e-01 : f32
    %18 = vector.broadcast %cst_13 : f32 to vector<8x32xf32>
    %19 = arith.mulf %18, %15 : vector<8x32xf32>
    %20 = arith.select %17, %15, %19 : vector<8x32xi1>, vector<8x32xf32>
    %c0_14 = arith.constant 0 : index
    %c0_15 = arith.constant 0 : index
    %21 = vector.load %arg6[%c0_14, %c0_15] : memref<8x32xf32, #tpu.memory_space<vmem>>, vector<8x32xf32>
    tpu.vector_store %arg6[%c0_14, %c0_15], %20 {strides = array<i32>} : memref<8x32xf32, #tpu.memory_space<vmem>>, vector<8x32xf32>,
    return
  }
  func.func @transform_0(%arg0: i32) -> (i32, i32) {
    %c0_i32 = arith.constant 0 : i32
    %c0_i32_0 = arith.constant 0 : i32
    return %arg0, %c0_i32 : i32, i32
  }
  func.func @transform_1(%arg0: i32) -> (i32, i32) {
    %c0_i32 = arith.constant 0 : i32
    %c0_i32_0 = arith.constant 0 : i32
    %c0_i32_1 = arith.constant 0 : i32
    return %c0_i32, %c0_i32_0 : i32, i32
  }
  func.func @transform_2(%arg0: i32) -> (i32, i32) {
    %c0_i32 = arith.constant 0 : i32
    %c0_i32_0 = arith.constant 0 : i32
    %c0_i32_1 = arith.constant 0 : i32
    return %c0_i32, %c0_i32_0 : i32, i32
  }
  func.func @transform_3(%arg0: i32) -> (i32, i32) {
    %c0_i32 = arith.constant 0 : i32
    %c0_i32_0 = arith.constant 0 : i32
    %c0_i32_1 = arith.constant 0 : i32
    return %c0_i32, %c0_i32_0 : i32, i32
  }
  func.func @transform_4(%arg0: i32) -> (i32, i32) {
    %c0_i32 = arith.constant 0 : i32
    %c0_i32_0 = arith.constant 0 : i32
    %c0_i32_1 = arith.constant 0 : i32
    return %c0_i32, %c0_i32_0 : i32, i32
  }
  func.func @transform_5(%arg0: i32) -> (i32, i32) {
    %c0_i32 = arith.constant 0 : i32
    %c0_i32_0 = arith.constant 0 : i32
    return %arg0, %c0_i32 : i32, i32
  }
}

</mosaic_0001>

<bundles_post_ra>
// kernel: tpu_custom_call.1
= control target key start
LH: loop header
LB: loop body
LE: loop exit
PB: predicated region body
PF: predicated region fallthrough
CT: control target
= control target key end

     0   :  { %10 = vsyncpa [#allocation3], 0  ;;  %s438_s0 = inlined_call_operand.hbm [shape: f32[4,6], index: 0, kind: input, shape index: {}]   ;;  %s439_s1 = inlined_call_operand.hbm [shape: f32[6,16], index: 1, kind: input, shape index: {}]   ;;  %s440_s2 = inlined_call_operand.vmem [shape: f32[1,16], index: 2, kind: input, shape index: {}]   ;;  %s441_s3 = inlined_call_operand.hbm [shape: f32[16,32], index: 3, kind: input, shape index: {}]   ;;  %s442_s4 = inlined_call_operand.vmem [shape: f32[1,32], index: 4, kind: input, shape index: {}]   ;;  %s443_s5 = inlined_call_operand.hbm [shape: f32[4,32], index: 5, kind: output, shape index: {}]  }
   0x1   :  { %11 = vsyncpa [#allocation6], 0 }
   0x2   :  { %12 = vsyncpa [#allocation4], 0 }
   0x3   :  { %17 = vsyncadd [#allocation3], 64  ;;  %s374_s18 = smov [#allocation5]   ;;  %s375_s20 = smov [#allocation2]  }
   0x4   :  { %s31_s19 = sshll.u32 %s374_s18, 4  ;;  %s18_s21 = sshll.u32 %s375_s20, 4  ;;  %s32_s19 = int_to_ptr.vmem [resolvable:$true] %s31_s19  ;;  %s19_s21 = int_to_ptr.vmem [resolvable:$true] %s18_s21 }
   0x5   :  { %s296_s22 = scalar_lea.vmem %s32_s19, 128  ;;  %p301_p1 = scmp.lt.s32.totalorder %s32_s19, %s32_s19 }
   0x6   :  { %p297_p0 = scmp.ne.s32.totalorder %s32_s19, %s296_s22  ;;  %p302_p2 = scmp.lt.s32.totalorder %s296_s22, %s296_s22 }
   0x8   :  { %p303_p3 = por %p302_p2, %p301_p1 }
   0xa   :  { %p304_p4 = pnand %p303_p3, %p297_p0 }
   0xc   :  { %307 = shalt.err (!%p304_p4)
}
   0xd   :  { %34 = dma.hbm_to_vmem [thread:$0]  %s439_s1, 128, %s32_s19, [#allocation6]  }
   0xe   :  { %s316_s25 = scalar_lea.vmem %s19_s21, 64  ;;  %s320_s26 = scalar_lea.vmem %s19_s21, 128 }
   0xf   :  { %p317_p5 = scmp.ne.s32.totalorder %s19_s21, %s316_s25  ;;  %p321_p6 = scmp.lt.s32.totalorder %s19_s21, %s19_s21 }
  0x10   :  { %p322_p7 = scmp.lt.s32.totalorder %s320_s26, %s316_s25 }
  0x12   :  { %p323_p8 = por %p322_p7, %p321_p6 }
  0x14   :  { %p324_p9 = pnand %p323_p8, %p317_p5 }
  0x16   :  { %327 = shalt.err (!%p324_p9)
}
  0x17   :  { %s376_s27 = smov 64   ;;  %s377_s28 = smov 4  }
  0x18   :  { %24 = dma.hbm_to_vmem [thread:$0]  %s438_s0, 64, %s19_s21, [#allocation3], %s376_s27, %s376_s27, %s377_s28  }
  0x19   :  { %s378_s6 = smov [#allocation7]  }
  0x1a   :  { %s42_s7 = sshll.u32 %s378_s6, 4  ;;  %s43_s7 = int_to_ptr.vmem [resolvable:$true] %s42_s7 }
  0x1b   :  { %s336_s1 = scalar_lea.vmem %s43_s7, 256  ;;  %p341_p11 = scmp.lt.s32.totalorder %s43_s7, %s43_s7 }
  0x1c   :  { %p337_p10 = scmp.ne.s32.totalorder %s43_s7, %s336_s1  ;;  %p342_p12 = scmp.lt.s32.totalorder %s336_s1, %s336_s1 }
  0x1e   :  { %p343_p13 = por %p342_p12, %p341_p11 }
  0x20   :  { %p344_p0 = pnand %p343_p13, %p337_p10 }
  0x22   :  { %347 = shalt.err (!%p344_p0)
}
  0x23   :  { %s379_s8 = smov 128   ;;  %s380_s9 = smov 8  }
  0x24   :  { %48 = dma.hbm_to_vmem [thread:$0]  %s441_s3, 256, %s43_s7, [#allocation6], %s379_s8, %s379_s8, %s380_s9  }
  0x25   :  { %368 = dma.done.wait [#allocation3], 128  }
  0x26   :  { %369 = vsyncadd [#allocation3], 4294967168 }
  0x27   :  { %370 = dma.done.wait [#allocation6], 384  }
  0x28   :  { %371 = vsyncadd [#allocation6], 4294966912  ;;  %v381_v0 = vmov 0.0   ;;  %vm382_vm0 = vmmov 0   ;;  %vm73_vm1 = vcmask 1045504   ;;  %vm69_vm2 = vcmask 48128  }
  0x29   :  { %266 = vmatprep.subr.mxu0 %v381_v0  ;;  %268 = vmatprep.mubr.msk.f32.mxu0 %vm382_vm0, %v381_v0  ;;  %v61_v1 = vld [vmem:[#allocation5] sm:$0x3f]  ;;  %v60_v2 = vld [vmem:[#allocation2] sm:$0xff]  ;;  %v151_v3 = vld [vmem:[#allocation7 + $0x8] sm:$0xff]  ;;  %vm159_vm4 = vcmask 130048   ;;  %vm236_vm6 = vcmask 261120  }
  0x2a   :  { %271 = vmatprep.subr.mxu1 %v381_v0  ;;  %275 = vmatprep.mubr.msk.f32.mxu1 %vm382_vm0, %v381_v0  ;;  %v150_v4 = vld [vmem:[#allocation7] sm:$0xff]  ;;  %v256_v5 = vld [vmem:[%s440_s2] ss:$0 sm:$0xff] }
  0x2b   :  { %267 = vmatpush3.msk.msra.mxu0 %vm73_vm1, %v61_v1  ;;  %272 = vmatpush3.msra.mxu1 %v151_v3  ;;  %v259_v11 = vld [vmem:[%s442_s4] ss:$0 sm:$0xff] }
  0x2c   :  { %269 = vmatmul.mubr.msk.f32.vlgmr.msra.gmra.mxu0 %vm69_vm2, %v60_v2  ;;  %273 = vmatprep.subr.mxu1 %v381_v0 }
  0x2d   :  { %274 = vmatpush3.msra.mxu1 %v150_v4 }
  0xec   :  { %v143_v6 = vpop.f32.mrf.mxu0 }
  0xed   :  { %v144_v7 = vadd.f32 %v256_v5, %v143_v6 }
  0xee   :  { %v270_v8 = vpop.f32.mrf.mxu0 }
  0xef   :  { %vm147_vm3 = vcmp.gt.f32.partialorder %v144_v7, 0.0  ;;  %v148_v9 = vmul.f32 0.2, %v144_v7 }
  0xf1   :  { %v149_v10 = vsel %vm147_vm3, %v144_v7, %v148_v9 }
  0xf2   :  { %276 = vmatmul.mubr.msk.f32.vlgmr.msra.gmra.mxu1 %vm159_vm4, %v149_v10 }
 0x1b2   :  { %v229_v12 = vpop.f32.mrf.mxu1 }
 0x1b3   :  { %v230_v13 = vadd.f32 %v259_v11, %v229_v12 }
 0x1b4   :  { %v277_v14 = vpop.f32.mrf.mxu1 }
 0x1b5   :  { %vm233_vm5 = vcmp.gt.f32.partialorder %v230_v13, 0.0  ;;  %v234_v15 = vmul.f32 0.2, %v230_v13 }
 0x1b7   :  { %v235_v16 = vsel %vm233_vm5, %v230_v13, %v234_v15 }
 0x1b8   :  { %237 = vst.msk [vmem:[#allocation8] sm:$0xff] %vm236_vm6, %v235_v16 }
 0x1b9   :  { %242 = vsyncadd [#allocation4], 64  ;;  %s383_s2 = smov [#allocation8]  }
 0x1ba   :  { %s243_s14 = sshll.u32 %s383_s2, 4  ;;  %s244_s14 = int_to_ptr.vmem [resolvable:$true] %s243_s14 }
 0x1bb   :  { %s348_s15 = scalar_lea.vmem %s244_s14, 64  ;;  %s352_s16 = scalar_lea.vmem %s244_s14, 128 }
 0x1bc   :  { %p349_p1 = scmp.ne.s32.totalorder %s244_s14, %s348_s15  ;;  %p353_p2 = scmp.lt.s32.totalorder %s244_s14, %s244_s14 }
 0x1bd   :  { %p354_p3 = scmp.lt.s32.totalorder %s352_s16, %s348_s15 }
 0x1bf   :  { %p355_p4 = por %p354_p3, %p353_p2 }
 0x1c1   :  { %p356_p5 = pnand %p355_p4, %p349_p1 }
 0x1c3   :  { %359 = shalt.err (!%p356_p5)
}
 0x1c4   :  { %249 = dma.vmem_to_hbm [thread:$0]  %s244_s14, 64, %s443_s5, [#allocation4], %s376_s27, %s376_s27, %s377_s28  }
 0x1c5   :  { %372 = dma.done.wait [#allocation4], 128  }
 0x1c6   :  { %373 = vsyncadd [#allocation4], 4294967168 }
 0x1c7   :  { %253 = vsyncpa [#allocation3], 1 }
 0x1c8   :  { %254 = vsyncpa [#allocation6], 1 }
 0x1c9   :  { %255 = vsyncpa [#allocation4], 1 }

</bundles_post_ra>
